<compile_context>
chip_gen: v7x
topology: tpu7x:2x2x1
jax: 0.10.0
libtpu: 0.0.40
codegen_flags: <defaults>
</compile_context>

<pallas_src>
import functools

import jax
import jax.numpy as jnp
from jax import lax
from jax.experimental import pallas as pl
from jax.experimental.pallas import tpu as pltpu

BN_EPS = 1e-5        # torch.nn.BatchNorm1d default eps
NORM_EPS = 1e-12     # torch.nn.functional.normalize default eps
LANE = 128

# Matmul operand dtype.  The review suggests bfloat16 for large batches
# (halves MXU passes on v6e/v7x); kept float32 by default so results stay
# numerically aligned with the float32 PyTorch reference at these shapes.
MATMUL_DTYPE = jnp.float32


def _round_up(x, m):
    return (x + m - 1) // m * m


def _vmem_spec():
    return pl.BlockSpec(memory_space=pltpu.MemorySpace.VMEM)


def _compiler_params(est_bytes):
    # Whole-array blocks: size the scoped VMEM limit explicitly so larger
    # batches don't trip the 16/32 MiB defaults on v5e/v6e (cap below the
    # 64 MiB physical VMEM of v7x).
    limit = int(min(64 * 1024 * 1024, max(32 * 1024 * 1024, 2 * est_bytes)))
    return pltpu.CompilerParams(vmem_limit_bytes=limit)


def _dot(a, b):
    return jnp.dot(a.astype(MATMUL_DTYPE), b.astype(MATMUL_DTYPE),
                   preferred_element_type=jnp.float32)


# ---------------------------------------------------------------------------
# Shared encoder body: Linear -> BatchNorm1d (batch stats) -> ReLU -> Linear
# ---------------------------------------------------------------------------
def _encoder(x_ref, w1_ref, b1_ref, g1_ref, be1_ref, w2_ref, b2_ref):
    x = x_ref[...].astype(jnp.float32)
    h = _dot(x, w1_ref[...]) + b1_ref[...]
    # BatchNorm1d with biased batch statistics (training-mode forward).
    mean = jnp.mean(h, axis=0, keepdims=True)
    cent = h - mean
    var = jnp.mean(cent * cent, axis=0, keepdims=True)
    h = cent * lax.rsqrt(var + BN_EPS) * g1_ref[...] + be1_ref[...]
    h = jnp.maximum(h, 0.0)                       # ReLU
    return _dot(h, w2_ref[...]) + b2_ref[...]     # final Linear (BN/ReLU dropped)


# ---------------------------------------------------------------------------
# Phase '1' (and "other" phases): encoder [+ row normalize], fully fused
# ---------------------------------------------------------------------------
def _phase1_kernel(x_ref, w1_ref, b1_ref, g1_ref, be1_ref, w2_ref, b2_ref,
                   out_ref, *, do_normalize):
    z = _encoder(x_ref, w1_ref, b1_ref, g1_ref, be1_ref, w2_ref, b2_ref)
    if do_normalize:                              # F.normalize(z, dim=1)
        sum_z = jnp.sum(z * z, axis=1, keepdims=True)
        inv_n = pl.reciprocal(jnp.maximum(jnp.sqrt(sum_z), NORM_EPS), approx=True)
        z = z * inv_n
    out_ref[...] = z


def encoder_forward(x, p, *, normalize):
    B = x.shape[0]
    d0, d1 = p["w1"].shape
    d2 = p["w2"].shape[1]
    est = 4 * (B * d0 + d0 * d1 + 4 * d1 + d1 * d2 + d2 + 4 * B * (d1 + d2))
    return pl.pallas_call(
        functools.partial(_phase1_kernel, do_normalize=normalize),
        out_shape=jax.ShapeDtypeStruct((B, d2), jnp.float32),
        in_specs=[_vmem_spec()] * 7,
        out_specs=_vmem_spec(),
        compiler_params=_compiler_params(est),
    )(x, p["w1"], p["b1"], p["g1"], p["be1"], p["w2"], p["b2"])


# ---------------------------------------------------------------------------
# Phase '2': encoder + ClusterlingLayer + cal_latent + target_dis, one kernel
# ---------------------------------------------------------------------------
def _phase2_kernel(x_ref, w1_ref, b1_ref, g1_ref, be1_ref, w2_ref, b2_ref,
                   cwp_ref, slab_ref, big_ref, *, alpha, n_clusters):
    z = _encoder(x_ref, w1_ref, b1_ref, g1_ref, be1_ref, w2_ref, b2_ref)
    B = z.shape[0]
    wp = cwp_ref[...]                 # (KP, D) cluster centers; rows >= K are zero
    KP = wp.shape[0]

    # ||z||^2 per row, shared by F.normalize, ClusterlingLayer and cal_latent.
    sum_z = jnp.sum(z * z, axis=1, keepdims=True)               # (B, 1)

    # normalized = F.normalize(latent, dim=1)
    inv_n = pl.reciprocal(jnp.maximum(jnp.sqrt(sum_z), NORM_EPS), approx=True)
    normalized = z * inv_n

    # ---- ClusterlingLayer: ||z||^2 + ||w||^2 - 2 z.w^T  (one MXU matmul) ----
    sum_w = jnp.sum(wp * wp, axis=1, keepdims=True)             # (KP, 1)
    dist1 = sum_z + jnp.transpose(sum_w) - 2.0 * _dot(z, wp.T)  # (B, KP)
    dist1 = jnp.maximum(dist1, 0.0)      # fp-cancellation guard (torch dist >= 0)
    valid = lax.broadcasted_iota(jnp.int32, (B, KP), 1) < n_clusters
    dmin = jnp.min(jnp.where(valid, dist1, jnp.inf), axis=1, keepdims=True)
    q = jnp.where(valid, jnp.exp(dmin - dist1), 0.0)
    q = q * pl.reciprocal(jnp.sum(q, axis=1, keepdims=True), approx=True)
    q = q * q
    q = q * pl.reciprocal(jnp.sum(q, axis=1, keepdims=True), approx=True)
    dist2 = dist1 * q                    # pad columns: x * 0 = 0
    dist1 = jnp.where(valid, dist1, 0.0)

    # ---- cal_latent(latent, alpha): same gram structure on the MXU ----
    gram = _dot(z, z.T)
    num = -2.0 * gram + sum_z + jnp.transpose(sum_z)
    if alpha != 1.0:
        num = num / alpha
        num = jnp.power(1.0 + num, -(alpha + 1.0) / 2.0)
    else:
        num = 1.0 / (1.0 + num)          # pow(x, -1) fast path: no log+exp
    row = lax.broadcasted_iota(jnp.int32, (B, B), 0)
    col = lax.broadcasted_iota(jnp.int32, (B, B), 1)
    diag_num = num * (row == col).astype(num.dtype)
    zerodiag = num - diag_num
    latent_p = zerodiag * pl.reciprocal(
        jnp.sum(zerodiag, axis=1, keepdims=True), approx=True)

    # ---- target_dis(latent_p) ----
    lq = (latent_p * latent_p) * pl.reciprocal(
        jnp.sum(latent_p, axis=1, keepdims=True), approx=True)
    latent_q = lq * pl.reciprocal(jnp.sum(lq, axis=1, keepdims=True), approx=True)

    # ---- coalesced, lane-dense writeback ----
    # slab layout: [ latent(D) | normalized(D) | dist1(KP) | dist2(KP) ] = 128*k lanes
    slab_ref[...] = jnp.concatenate([z, normalized, dist1, dist2], axis=1)
    big_ref[0] = num
    big_ref[1] = latent_p + diag_num
    big_ref[2] = latent_q + diag_num


def clustering_forward(x, p, alpha=1.0):
    B = x.shape[0]
    d0, d1 = p["w1"].shape
    D = p["w2"].shape[1]
    K = p["cw"].shape[0]
    slab_w = _round_up(2 * D + 2 * K, LANE)
    KP = (slab_w - 2 * D) // 2            # cluster segment width (>= K)
    # Pad the cluster weight rows once, outside the kernel, so all in-kernel
    # cluster tiles are KP lanes wide (no ragged (B, 10) tiles).
    cw_pad = jnp.zeros((KP, D), jnp.float32).at[:K, :].set(p["cw"])
    est = 4 * (B * d0 + d0 * d1 + 4 * d1 + d1 * D + D + KP * D
               + 4 * B * (d1 + D + KP) + 10 * B * B + B * slab_w + 3 * B * B)
    slab, big = pl.pallas_call(
        functools.partial(_phase2_kernel, alpha=float(alpha), n_clusters=K),
        out_shape=(jax.ShapeDtypeStruct((B, slab_w), jnp.float32),
                   jax.ShapeDtypeStruct((3, B, B), jnp.float32)),
        in_specs=[_vmem_spec()] * 8,
        out_specs=(_vmem_spec(), _vmem_spec()),
        compiler_params=_compiler_params(est),
    )(x, p["w1"], p["b1"], p["g1"], p["be1"], p["w2"], p["b2"], cw_pad)
    return slab, big, D, K, KP


# ---------------------------------------------------------------------------
# Parameter init (xavier-uniform like the PyTorch module) and forward dispatch
# ---------------------------------------------------------------------------
def xavier_uniform(key, fan_in, fan_out, shape):
    bound = (6.0 / (fan_in + fan_out)) ** 0.5
    return jax.random.uniform(key, shape, jnp.float32, -bound, bound)


def init_params(key, dims):
    d0, d1, d2, k = dims
    k1, k2, k3 = jax.random.split(key, 3)
    return {
        # linear weights stored transposed: [in, out]
        "w1": xavier_uniform(k1, d0, d1, (d0, d1)),
        "b1": jnp.zeros((1, d1), jnp.float32),
        "g1": jnp.ones((1, d1), jnp.float32),    # BatchNorm1d gamma
        "be1": jnp.zeros((1, d1), jnp.float32),  # BatchNorm1d beta
        "w2": xavier_uniform(k2, d1, d2, (d1, d2)),
        "b2": jnp.zeros((1, d2), jnp.float32),
        # ClusterlingLayer weight: (out_features, in_features) = (K, d2)
        "cw": xavier_uniform(k3, d2, k, (k, d2)),
    }


def st_clustering_forward(x, params, phase="1", t_alpha=1.0):
    if phase == "2":
        slab, big, D, K, KP = clustering_forward(x, params, alpha=1.0)
        return {
            "latent": slab[:, :D],
            "latent_dist1": slab[:, 2 * D:2 * D + K],
            "latent_dist2": slab[:, 2 * D + KP:2 * D + KP + K],
            "latent_q": big[2],
            "latent_p": big[1],
            "num": big[0],
            "normalized": slab[:, D:2 * D],
        }
    # phase '1' -> normalized latent; any other phase -> raw encoder latent.
    return encoder_forward(x, params, normalize=(phase == "1"))


if __name__ == "__main__":
    dims = [16, 32, 32, 10]   # [input, hidden, latent (dims[-2]), n_clusters]
    B = 8

    key = jax.random.PRNGKey(0)
    kparam, kx = jax.random.split(key)
    params = init_params(kparam, dims)
    x = jax.random.normal(kx, (B, dims[0]), jnp.float32)

    # default forward (phase == '1'): normalized encoder latent
    out_phase1 = st_clustering_forward(x, params, phase="1")
    # phase '2' branch: clustering distances + t-distribution latents
    out_phase2 = st_clustering_forward(x, params, phase="2")

    jax.block_until_ready((out_phase1, out_phase2))
    print("KERNEL_OK")
</pallas_src>

<mosaic_0001>
module attributes {stable_mosaic.version = 11 : i64} {
  func.func @_phase1_kernel(%arg0: memref<8x16xf32, #tpu.memory_space<vmem>>, %arg1: memref<16x32xf32, #tpu.memory_space<vmem>>, %arg2: memref<1x32xf32, #tpu.memory_space<vmem>>, %arg3: memref<1x32xf32, #tpu.memory_space<vmem>>, %arg4: memref<1x32xf32, #tpu.memory_space<vmem>>, %arg5: memref<32x32xf32, #tpu.memory_space<vmem>>, %arg6: memref<1x32xf32, #tpu.memory_space<vmem>>, %arg7: memref<8x32xf32, #tpu.memory_space<vmem>>) attributes {dimension_semantics = [], scalar_prefetch = 0 : i64, scratch_operands = 0 : i64, tpu.core_type = #tpu.core_type<tc>} {
    %c0 = arith.constant 0 : index
    %c0_0 = arith.constant 0 : index
    %0 = vector.load %arg0[%c0, %c0_0] : memref<8x16xf32, #tpu.memory_space<vmem>>, vector<8x16xf32>
    %c0_1 = arith.constant 0 : index
    %c0_2 = arith.constant 0 : index
    %1 = vector.load %arg1[%c0_1, %c0_2] : memref<16x32xf32, #tpu.memory_space<vmem>>, vector<16x32xf32>
    %cst = arith.constant dense<0.000000e+00> : vector<8x32xf32>
    %2 = tpu.matmul %0, %1, %cst {dimension_numbers = #tpu.dot_dimension_numbers<[1], [0], [0], [1], [0, 0, 1, 1], [], []>} : vector<8x16xf32>, vector<16x32xf32>, vector<8x32xf32> -> vector<8x32xf32>
    %c0_3 = arith.constant 0 : index
    %c0_4 = arith.constant 0 : index
    %3 = vector.load %arg2[%c0_3, %c0_4] : memref<1x32xf32, #tpu.memory_space<vmem>>, vector<1x32xf32>
    %4 = vector.broadcast %3 : vector<1x32xf32> to vector<8x32xf32>
    %5 = arith.addf %2, %4 : vector<8x32xf32>
    %cst_5 = arith.constant dense<0.000000e+00> : vector<32xf32>
    %6 = vector.multi_reduction <add>, %5, %cst_5 [0] : vector<8x32xf32> to vector<32xf32>
    %7 = vector.shape_cast %6 : vector<32xf32> to vector<1x32xf32>
    %cst_6 = arith.constant 8.000000e+00 : f32
    %8 = vector.broadcast %cst_6 : f32 to vector<1x32xf32>
    %9 = arith.divf %7, %8 : vector<1x32xf32>
    %10 = vector.broadcast %9 : vector<1x32xf32> to vector<8x32xf32>
    %11 = arith.subf %5, %10 : vector<8x32xf32>
    %12 = arith.mulf %11, %11 : vector<8x32xf32>
    %cst_7 = arith.constant dense<0.000000e+00> : vector<32xf32>
    %13 = vector.multi_reduction <add>, %12, %cst_7 [0] : vector<8x32xf32> to vector<32xf32>
    %14 = vector.shape_cast %13 : vector<32xf32> to vector<1x32xf32>
    %cst_8 = arith.constant 8.000000e+00 : f32
    %15 = vector.broadcast %cst_8 : f32 to vector<1x32xf32>
    %16 = arith.divf %14, %15 : vector<1x32xf32>
    %cst_9 = arith.constant 9.99999974E-6 : f32
    %17 = vector.broadcast %cst_9 : f32 to vector<1x32xf32>
    %18 = arith.addf %16, %17 : vector<1x32xf32>
    %19 = math.rsqrt %18 : vector<1x32xf32>
    %20 = vector.broadcast %19 : vector<1x32xf32> to vector<8x32xf32>
    %21 = arith.mulf %11, %20 : vector<8x32xf32>
    %c0_10 = arith.constant 0 : index
    %c0_11 = arith.constant 0 : index
    %22 = vector.load %arg3[%c0_10, %c0_11] : memref<1x32xf32, #tpu.memory_space<vmem>>, vector<1x32xf32>
    %23 = vector.broadcast %22 : vector<1x32xf32> to vector<8x32xf32>
    %24 = arith.mulf %21, %23 : vector<8x32xf32>
    %c0_12 = arith.constant 0 : index
    %c0_13 = arith.constant 0 : index
    %25 = vector.load %arg4[%c0_12, %c0_13] : memref<1x32xf32, #tpu.memory_space<vmem>>, vector<1x32xf32>
    %26 = vector.broadcast %25 : vector<1x32xf32> to vector<8x32xf32>
    %27 = arith.addf %24, %26 : vector<8x32xf32>
    %cst_14 = arith.constant 0.000000e+00 : f32
    %28 = vector.broadcast %cst_14 : f32 to vector<8x32xf32>
    %29 = arith.maximumf %27, %28 : vector<8x32xf32>
    %c0_15 = arith.constant 0 : index
    %c0_16 = arith.constant 0 : index
    %30 = vector.load %arg5[%c0_15, %c0_16] : memref<32x32xf32, #tpu.memory_space<vmem>>, vector<32x32xf32>
    %cst_17 = arith.constant dense<0.000000e+00> : vector<8x32xf32>
    %31 = tpu.matmul %29, %30, %cst_17 {dimension_numbers = #tpu.dot_dimension_numbers<[1], [0], [0], [1], [0, 0, 1, 1], [], []>} : vector<8x32xf32>, vector<32x32xf32>, vector<8x32xf32> -> vector<8x32xf32>
    %c0_18 = arith.constant 0 : index
    %c0_19 = arith.constant 0 : index
    %32 = vector.load %arg6[%c0_18, %c0_19] : memref<1x32xf32, #tpu.memory_space<vmem>>, vector<1x32xf32>
    %33 = vector.broadcast %32 : vector<1x32xf32> to vector<8x32xf32>
    %34 = arith.addf %31, %33 : vector<8x32xf32>
    %35 = arith.mulf %34, %34 : vector<8x32xf32>
    %cst_20 = arith.constant dense<0.000000e+00> : vector<8xf32>
    %36 = vector.multi_reduction <add>, %35, %cst_20 [1] : vector<8x32xf32> to vector<8xf32>
    %37 = vector.shape_cast %36 : vector<8xf32> to vector<8x1xf32>
    %38 = math.sqrt %37 : vector<8x1xf32>
    %cst_21 = arith.constant 9.99999996E-13 : f32
    %39 = vector.broadcast %cst_21 : f32 to vector<8x1xf32>
    %40 = arith.maximumf %38, %39 : vector<8x1xf32>
    %41 = tpu.reciprocal %40 {approx = true} : vector<8x1xf32> -> vector<8x1xf32>
    %42 = vector.broadcast %41 : vector<8x1xf32> to vector<8x32xf32>
    %43 = arith.mulf %34, %42 : vector<8x32xf32>
    %c0_22 = arith.constant 0 : index
    %c0_23 = arith.constant 0 : index
    %44 = vector.load %arg7[%c0_22, %c0_23] : memref<8x32xf32, #tpu.memory_space<vmem>>, vector<8x32xf32>
    tpu.vector_store %arg7[%c0_22, %c0_23], %43 {strides = array<i32>} : memref<8x32xf32, #tpu.memory_space<vmem>>, vector<8x32xf32>,
    return
  }
}

</mosaic_0001>

<bundles_post_ra>
// kernel: tpu_custom_call.1
= control target key start
LH: loop header
LB: loop body
LE: loop exit
PB: predicated region body
PF: predicated region fallthrough
CT: control target
= control target key end

     0   :  { %12 = vsyncpa [#allocation3], 0  ;;  %s575_s0 = inlined_call_operand.hbm [shape: f32[8,16], index: 0, kind: input, shape index: {}]   ;;  %s576_s1 = inlined_call_operand.hbm [shape: f32[16,32], index: 1, kind: input, shape index: {}]   ;;  %s577_s2 = inlined_call_operand.vmem [shape: f32[1,32], index: 2, kind: input, shape index: {}]   ;;  %s578_s3 = inlined_call_operand.vmem [shape: f32[1,32], index: 3, kind: input, shape index: {}]   ;;  %s579_s4 = inlined_call_operand.vmem [shape: f32[1,32], index: 4, kind: input, shape index: {}]   ;;  %s580_s5 = inlined_call_operand.hbm [shape: f32[32,32], index: 5, kind: input, shape index: {}]   ;;  %s581_s6 = inlined_call_operand.vmem [shape: f32[1,32], index: 6, kind: input, shape index: {}]   ;;  %s582_s7 = inlined_call_operand.hbm [shape: f32[8,32], index: 7, kind: output, shape index: {}]  }
   0x1   :  { %13 = vsyncpa [#allocation6], 0 }
   0x2   :  { %14 = vsyncpa [#allocation4], 0  ;;  %s455_s24 = smov [#allocation5]   ;;  %s361_s28 = scalar_lea.hbm %s576_s1, 256 }
   0x3   :  { %s30_s25 = sshll.u32 %s455_s24, 4  ;;  %p362_p0 = scmp.ne.s32.totalorder %s576_s1, %s361_s28  ;;  %s31_s25 = int_to_ptr.vmem [resolvable:$true] %s30_s25 }
   0x4   :  { %p365_p1 = scmp.lt.u32.totalorder %s361_s28, %s576_s1 }
   0x6   :  { %p367_p2 = pnand %p365_p1, %p362_p0 }
   0x8   :  { %370 = shalt.err (!%p367_p2)
}
   0x9   :  { %s371_s10 = scalar_lea.vmem %s31_s25, 256  ;;  %p376_p4 = scmp.lt.s32.totalorder %s31_s25, %s31_s25 }
   0xa   :  { %p372_p3 = scmp.ne.s32.totalorder %s31_s25, %s371_s10  ;;  %p377_p5 = scmp.lt.s32.totalorder %s371_s10, %s371_s10 }
   0xc   :  { %p378_p6 = por %p377_p5, %p376_p4 }
   0xe   :  { %p379_p7 = pnand %p378_p6, %p372_p3 }
  0x10   :  { %382 = shalt.err (!%p379_p7)
}
  0x11   :  { %s456_s11 = smov 128   ;;  %s457_s12 = smov 8  }
  0x12   :  { %36 = dma.hbm_to_vmem [thread:$0]  %s576_s1, 256, %s31_s25, [#allocation6], %s456_s11, %s456_s11, %s457_s12  }
  0x13   :  { %s458_s15 = smov [#allocation2]   ;;  %s459_s17 = smov [#allocation7]  }
  0x14   :  { %s21_s16 = sshll.u32 %s458_s15, 4  ;;  %s48_s18 = sshll.u32 %s459_s17, 4  ;;  %s22_s16 = int_to_ptr.vmem [resolvable:$true] %s21_s16  ;;  %s49_s18 = int_to_ptr.vmem [resolvable:$true] %s48_s18 }
  0x15   :  { %s383_s21 = scalar_lea.hbm %s575_s0, 128 }
  0x16   :  { %p384_p8 = scmp.ne.s32.totalorder %s575_s0, %s383_s21  ;;  %p387_p9 = scmp.lt.u32.totalorder %s383_s21, %s575_s0 }
  0x18   :  { %p389_p10 = pnand %p387_p9, %p384_p8 }
  0x1a   :  { %392 = shalt.err (!%p389_p10)
}
  0x1b   :  { %s393_s1 = scalar_lea.vmem %s22_s16, 128  ;;  %p398_p12 = scmp.lt.s32.totalorder %s22_s16, %s22_s16 }
  0x1c   :  { %p394_p11 = scmp.ne.s32.totalorder %s22_s16, %s393_s1  ;;  %p399_p13 = scmp.lt.s32.totalorder %s393_s1, %s393_s1 }
  0x1e   :  { %p400_p0 = por %p399_p13, %p398_p12 }
  0x20   :  { %p401_p1 = pnand %p400_p0, %p394_p11 }
  0x22   :  { %404 = shalt.err (!%p401_p1)
}
  0x23   :  { %24 = dma.hbm_to_vmem [thread:$0]  %s575_s0, 128, %s22_s16, [#allocation3]  }
  0x24   :  { %s405_s30 = scalar_lea.hbm %s580_s5, 512 }
  0x25   :  { %p406_p2 = scmp.ne.s32.totalorder %s580_s5, %s405_s30  ;;  %p409_p3 = scmp.lt.u32.totalorder %s405_s30, %s580_s5 }
  0x27   :  { %p411_p4 = pnand %p409_p3, %p406_p2 }
  0x29   :  { %414 = shalt.err (!%p411_p4)
}
  0x2a   :  { %s415_s14 = scalar_lea.vmem %s49_s18, 512  ;;  %p420_p6 = scmp.lt.s32.totalorder %s49_s18, %s49_s18 }
  0x2b   :  { %p416_p5 = scmp.ne.s32.totalorder %s49_s18, %s415_s14  ;;  %p421_p7 = scmp.lt.s32.totalorder %s415_s14, %s415_s14 }
  0x2d   :  { %p422_p8 = por %p421_p7, %p420_p6 }
  0x2f   :  { %p423_p9 = pnand %p422_p8, %p416_p5 }
  0x31   :  { %426 = shalt.err (!%p423_p9)
}
  0x32   :  { %54 = dma.hbm_to_vmem [thread:$0]  %s580_s5, 512, %s49_s18, [#allocation6], %s456_s11, %s456_s11, %s457_s12  }
  0x33   :  { %449 = dma.done.wait [#allocation3], 128  }
  0x34   :  { %450 = vsyncadd [#allocation3], 4294967168 }
  0x35   :  { %451 = dma.done.wait [#allocation6], 768  }
  0x36   :  { %452 = vsyncadd [#allocation6], 4294966528  ;;  %v460_v0 = vmov 0.0|0.0   ;;  %vm461_vm0 = vmmov 0   ;;  %v462_v1 = vmov 0.0   ;;  %v67_v2 = vld [vmem:[#allocation5] sm:$0xff] }
  0x37   :  { %337 = vmatprep.subr.bf16.mxu0 %v460_v0  ;;  %323 = vmatprep.mubr.msk.f32.mxu0 %vm461_vm0, %v462_v1  ;;  %v68_v3 = vld [vmem:[#allocation5 + $0x8] sm:$0xff]  ;;  %v66_v5 = vld [vmem:[#allocation2] sm:$0xff]  ;;  %vm76_vm1 = vcmask 130048   ;;  %v190_v6 = vld [vmem:[#allocation7] sm:$0xff]  ;;  %vm150_vm2 = vcmask 261120  }
  0x38   :  { %340 = vmatprep.subr.bf16.mxu1 %v460_v0  ;;  %334 = vmatprep.mubr.msk.f32.mxu1 %vm461_vm0, %v462_v1  ;;  %v338_v4 = vpack.c.bf16 %v68_v3, %v67_v2  ;;  %v191_v7 = vld [vmem:[#allocation7 + $0x8] sm:$0xff]  ;;  %v192_v9 = vld [vmem:[#allocation7 + $0x10] sm:$0xff]  ;;  %v193_v10 = vld [vmem:[#allocation7 + $0x18] sm:$0xff] }
  0x39   :  { %v341_v8 = vpack.c.bf16 %v191_v7, %v190_v6  ;;  %v344_v11 = vpack.c.bf16 %v193_v10, %v192_v9  ;;  %v305_v12 = vld [vmem:[%s577_s2] ss:$0 sm:$0xff] }
  0x3a   :  { %339 = vmatpush3.bf16.msra.mxu0 %v338_v4  ;;  %v307_v36 = vld [vmem:[%s578_s3] ss:$0 sm:$0xff]  ;;  %s463_s3 = smov [#allocation8]  }
  0x3b   :  { %342 = vmatpush3.bf16.msra.mxu1 %v341_v8  ;;  %v308_v38 = vld [vmem:[%s579_s4] ss:$0 sm:$0xff]  ;;  %s295_s4 = sshll.u32 %s463_s3, 4  ;;  %s296_s4 = int_to_ptr.vmem [resolvable:$true] %s295_s4 }
  0x3c   :  { %343 = vmatprep.subr.bf16.mxu1 %v460_v0  ;;  %v309_v42 = vld [vmem:[%s581_s6] ss:$0 sm:$0xff]  ;;  %s427_s6 = scalar_lea.vmem %s296_s4, 128  ;;  %p432_p11 = scmp.lt.s32.totalorder %s296_s4, %s296_s4 }
  0x3d   :  { %324 = vmatmul.mubr.msk.f32.vlgmr.msra.gmra.mrb[0].mxu0 %vm76_vm1, %v66_v5  ;;  %p428_p10 = scmp.ne.s32.totalorder %s296_s4, %s427_s6  ;;  %p433_p12 = scmp.lt.s32.totalorder %s427_s6, %s427_s6 }
  0x3f   :  { %345 = vmatpush3.bf16.msra.mxu1 %v344_v11  ;;  %p434_p13 = por %p433_p12, %p432_p11 }
  0x41   :  { %p435_p0 = pnand %p434_p13, %p428_p10 }
 0x110   :  { %v146_v13 = vpop.f32.mrb[0].mxu0 }
 0x111   :  { %v147_v14 = vadd.f32 %v305_v12, %v146_v13  ;;  %v325_v15 = vpop.f32.mrb[1].mxu0 }
 0x113   :  { %v151_v16 = vsel %vm150_vm2, %v147_v14, 0.0 }
 0x114   :  { %v152_v17 = vrot.slane %v151_v16, 4 }
 0x116   :  { %v153_v18 = vadd.f32 %v152_v17, %v151_v16 }
 0x118   :  { %v154_v19 = vrot.slane %v153_v18, 2 }
 0x11a   :  { %v155_v20 = vadd.f32 %v154_v19, %v153_v18 }
 0x11c   :  { %v156_v21 = vrot.slane %v155_v20, 1 }
 0x11e   :  { %v157_v22 = vadd.f32 %v156_v21, %v155_v20 }
 0x120   :  { %v159_v23 = vmul.f32 0.125, %v157_v22 }
 0x122   :  { %v160_v24 = vsub.f32 %v147_v14, %v159_v23 }
 0x124   :  { %v161_v25 = vmul.f32 %v160_v24, %v160_v24 }
 0x126   :  { %v162_v26 = vsel %vm150_vm2, %v161_v25, 0.0 }
 0x127   :  { %v163_v27 = vrot.slane %v162_v26, 4 }
 0x129   :  { %v164_v28 = vadd.f32 %v163_v27, %v162_v26 }
 0x12b   :  { %v165_v29 = vrot.slane %v164_v28, 2 }
 0x12d   :  { %v166_v30 = vadd.f32 %v165_v29, %v164_v28 }
 0x12f   :  { %v167_v31 = vrot.slane %v166_v30, 1 }
 0x131   :  { %v168_v32 = vadd.f32 %v167_v31, %v166_v30 }
 0x133   :  { %v169_v33 = vmul.f32 0.125, %v168_v32 }
 0x135   :  { %v170_v34 = vadd.f32 1e-05, %v169_v33 }
 0x137   :  { %355 = vrsqrt.f32 %v170_v34 }
 0x141   :  { %v356_v35 = vpop.eup %355 }
 0x142   :  { %v172_v37 = vmul.f32 %v356_v35, %v160_v24 }
 0x144   :  { %v180_v39 = vmul.f32 %v307_v36, %v172_v37 }
 0x146   :  { %v188_v40 = vadd.f32 %v308_v38, %v180_v39 }
 0x148   :  { %v189_v41 = vmax.f32 %v188_v40, 0.0 }
 0x14a   :  { %335 = vmatmul.mubr.msk.f32.vlgmr.msra.gmra.mrb[0].mxu1 %vm150_vm2, %v189_v41 }
 0x21d   :  { %v270_v43 = vpop.f32.mrb[0].mxu1 }
 0x21e   :  { %v271_v44 = vadd.f32 %v309_v42, %v270_v43  ;;  %v336_v45 = vpop.f32.mrb[1].mxu1 }
 0x220   :  { %v274_v46 = vmul.f32 %v271_v44, %v271_v44 }
 0x222   :  { %v275_v47 = vsel %vm150_vm2, %v274_v46, 0.0 }
 0x223   :  { %276 = vadd.xlane.f32.xlu0 %v275_v47 }
 0x2b0   :  { %v277_v48 = vpop.xlane.xlu0 %276 }
 0x2b1   :  { %357 = vrsqrt.f32 %v277_v48  ;;  %vm280_vm3 = vcmp.eq.f32.partialorder %v277_v48, inf  ;;  %v283_v51 = vand.u32 2147483648, %v277_v48  ;;  %vm282_vm4 = vcmp.eq.f32.partialorder %v277_v48, 0.0 }
 0x2bb   :  { %v358_v49 = vpop.eup %357 }
 0x2bc   :  { %v279_v50 = vmul.f32 %v358_v49, %v277_v48 }
 0x2be   :  { %v281_v52 = vsel %vm280_vm3, %v277_v48, %v279_v50 }
 0x2bf   :  { %v284_v53 = vsel %vm282_vm4, %v283_v51, %v281_v52 }
 0x2c0   :  { %v285_v54 = vmax.f32 %v284_v53, 1e-12 }
 0x2c2   :  { %359 = vrcp.f32 %v285_v54 }
 0x2cc   :  { %v360_v55 = vpop.eup %359 }
 0x2cd   :  { %v287_v56 = vmul.f32 %v360_v55, %v271_v44 }
 0x2cf   :  { %288 = vst.msk [vmem:[#allocation8] sm:$0xff] %vm150_vm2, %v287_v56 }
 0x2d0   :  { %438 = shalt.err (!%p435_p0)
}
 0x2d1   :  { %s439_s22 = scalar_lea.hbm %s582_s7, 128 }
 0x2d2   :  { %p440_p1 = scmp.ne.s32.totalorder %s582_s7, %s439_s22  ;;  %p443_p2 = scmp.lt.u32.totalorder %s439_s22, %s582_s7 }
 0x2d4   :  { %p445_p3 = pnand %p443_p2, %p440_p1 }
 0x2d6   :  { %448 = shalt.err (!%p445_p3)
}
 0x2d7   :  { %298 = dma.vmem_to_hbm [thread:$0]  %s296_s4, 128, %s582_s7, [#allocation4]  }
 0x2d8   :  { %453 = dma.done.wait [#allocation4], 128  }
 0x2d9   :  { %454 = vsyncadd [#allocation4], 4294967168 }
 0x2da   :  { %302 = vsyncpa [#allocation3], 1 }
 0x2db   :  { %303 = vsyncpa [#allocation6], 1 }
 0x2dc   :  { %304 = vsyncpa [#allocation4], 1 }

</bundles_post_ra>
